<compile_context>
chip_gen: v7x
topology: tpu7x:2x2x1
jax: 0.10.0
libtpu: 0.0.40
codegen_flags: <defaults>
</compile_context>

<pallas_src>
import functools

import jax
import jax.numpy as jnp
from jax.experimental import pallas as pl
from jax.experimental.pallas import tpu as pltpu


def _gated_kernel(x_ref, m_ref, wg_ref, bg_ref, wt_ref, bt_ref, o_ref):
    # x_ref:  (TB, S, D) input dtype     m_ref:  (TB, S) f32
    # wg_ref: (D, D) compute dtype       bg_ref: (1, D) f32
    # wt_ref: (1, D) f32                 bt_ref: (1,)  f32 in SMEM
    TB, S, D = x_ref.shape
    x = x_ref[...]                                            # (TB, S, D)

    # Flatten to a single big MXU matmul: (TB*S, D) @ (D, D), f32 accumulate.
    x2 = x.reshape(TB * S, D)
    g2 = jnp.tanh(
        jnp.dot(x2.astype(wg_ref.dtype), wg_ref[...],
                preferred_element_type=jnp.float32)
        + bg_ref[...]
    )                                                         # (TB*S, D) f32

    # linear_t: replace the N=1 matmul with a VPU multiply + lane reduce.
    g3 = g2.reshape(TB, S, D)
    wt = wt_ref[...].reshape(1, 1, D)
    gt = jnp.sum(g3 * wt, axis=-1) + bt_ref[0]                # (TB, S) lane-dense

    # Masked softmax over the sequence axis (lanes), matching the reference:
    # mask-before-max, e*m, +1e-6 denominator.
    m = m_ref[...]                                            # (TB, S)
    gt = gt * m
    e = jnp.exp(gt - jnp.max(gt, axis=-1, keepdims=True))
    e = e * m
    p = e / (jnp.sum(e, axis=-1, keepdims=True) + 1e-6)       # (TB, S)

    o_ref[...] = (x * p[:, :, None]).astype(o_ref.dtype)


def _choose_batch_block(B, S, D, itemsize):
    """Pick TB = batch elements per grid step."""
    # The in-kernel flatten (TB, S, D) -> (TB*S, D) is layout-trivial only when
    # S is a sublane multiple; otherwise fall back to one batch per step.
    if S % 8 != 0:
        return 1
    # Target >= ~256 rows per step to fill the MXU M dimension, while keeping
    # the double-buffered (TB, S, D) input + output blocks inside a VMEM
    # budget that is safe for v7x's 64 MiB (Wg stays resident on top of this).
    vmem_budget = 24 * 1024 * 1024
    per_batch = 2 * 2 * S * D * itemsize                 # in + out, 2x buffered
    tb = min(B, max(1, pl.cdiv(256, S)), max(1, vmem_budget // per_batch))
    while B % tb:
        tb -= 1
    # v7x feeds its 2 TensorCores from "parallel" grid axes: prefer >= 2 grid
    # steps when halving still keeps the per-step matmul MXU-sized.
    if B // tb < 2 and tb % 2 == 0 and (tb // 2) * S >= 128:
        tb //= 2
    return tb


@functools.partial(jax.jit, static_argnames=("compute_dtype",))
def self_attention_gated_bsd(x_bsd, mask_bs, wg, bg, wt, bt,
                             compute_dtype=jnp.bfloat16):
    """Batch-major core: x (batch, seq, D), mask (batch, seq) -> (batch, seq, D).

    No layout transposes; this is the preferred entry point at real sizes.
    """
    B, S, D = x_bsd.shape
    tb = _choose_batch_block(B, S, D, jnp.dtype(x_bsd.dtype).itemsize)

    wg_t = wg.T.astype(compute_dtype)                     # (D, D), bf16 fast path
    bg_row = bg.reshape(1, D).astype(jnp.float32)         # added post-accumulate
    wt_row = wt.reshape(1, D).astype(jnp.float32)
    bt_1 = bt.reshape(1).astype(jnp.float32)
    mask_f = mask_bs.astype(jnp.float32)

    return pl.pallas_call(
        _gated_kernel,
        out_shape=jax.ShapeDtypeStruct((B, S, D), x_bsd.dtype),
        grid_spec=pltpu.PrefetchScalarGridSpec(
            num_scalar_prefetch=0,
            grid=(B // tb,),
            in_specs=[
                pl.BlockSpec((tb, S, D), lambda b: (b, 0, 0)),      # x
                pl.BlockSpec((tb, S), lambda b: (b, 0)),            # mask (lane-dense)
                pl.BlockSpec((D, D), lambda b: (0, 0)),             # Wg^T (resident)
                pl.BlockSpec((1, D), lambda b: (0, 0)),             # bg
                pl.BlockSpec((1, D), lambda b: (0, 0)),             # Wt row
                pl.BlockSpec(memory_space=pltpu.MemorySpace.SMEM),  # bt scalar
            ],
            out_specs=pl.BlockSpec((tb, S, D), lambda b: (b, 0, 0)),
        ),
        compiler_params=pltpu.CompilerParams(
            dimension_semantics=("parallel",),
            vmem_limit_bytes=48 * 1024 * 1024,
        ),
    )(x_bsd, mask_f, wg_t, bg_row, wt_row, bt_1)


@functools.partial(jax.jit, static_argnames=("compute_dtype",))
def self_attention_gated(x_sbd, mask_bs, wg, bg, wt, bt,
                         compute_dtype=jnp.bfloat16):
    """PyTorch-layout wrapper: x (seq, batch, D), mask (batch, seq).

    The two transposes only exist to match the nn.Module API; callers that can
    produce/consume batch-major data should use self_attention_gated_bsd.
    """
    x_bsd = jnp.transpose(x_sbd, (1, 0, 2))
    out_bsd = self_attention_gated_bsd(x_bsd, mask_bs, wg, bg, wt, bt,
                                       compute_dtype=compute_dtype)
    return jnp.transpose(out_bsd, (1, 0, 2))


def _reference(x_sbd, mask_bs, wg, bg, wt, bt):
    g = jnp.tanh(jnp.einsum("sbd,ed->sbe", x_sbd, wg) + bg)
    gt = (jnp.einsum("sbd,od->sbo", g, wt) + bt)[:, :, 0]      # (S, B)
    gt = gt.T                                                  # (B, S)
    m = mask_bs.astype(jnp.float32)
    gt = gt * m
    e = jnp.exp(gt - jnp.max(gt, axis=1, keepdims=True))
    e = e * m
    p = e / (jnp.sum(e, axis=1, keepdims=True) + 1e-6)         # (B, S)
    return x_sbd * p.T[:, :, None]


if __name__ == "__main__":
    seq, batch, hidden = 8, 2, 32

    key = jax.random.PRNGKey(0)
    kx, kg_w, kg_b, kt_w, kt_b = jax.random.split(key, 5)

    x = jax.random.normal(kx, (seq, batch, hidden), dtype=jnp.float32)

    # Deterministic "nn.Linear"-style init (uniform +/- 1/sqrt(fan_in)).
    bound = 1.0 / (hidden ** 0.5)
    wg = jax.random.uniform(kg_w, (hidden, hidden), jnp.float32, -bound, bound)
    bg = jax.random.uniform(kg_b, (hidden,), jnp.float32, -bound, bound)
    wt = jax.random.uniform(kt_w, (1, hidden), jnp.float32, -bound, bound)
    bt = jax.random.uniform(kt_b, (1,), jnp.float32, -bound, bound)

    # Mask: 1 = valid, 0 = padding. Batch 1 has the last 3 positions padded.
    mask = jnp.ones((batch, seq), dtype=jnp.float32)
    mask = mask.at[1, seq - 3:].set(0.0)

    ref = _reference(x, mask, wg, bg, wt, bt)

    # Exact path: f32 matmul, bit-level module semantics.
    out_f32 = jax.block_until_ready(
        self_attention_gated(x, mask, wg, bg, wt, bt,
                             compute_dtype=jnp.float32))
    assert out_f32.shape == (seq, batch, hidden)
    assert jnp.allclose(out_f32, ref, atol=1e-5, rtol=1e-5), "f32 mismatch"

    # Fast path: bf16 MXU matmul with f32 accumulate (perf-review default).
    out_bf16 = jax.block_until_ready(
        self_attention_gated(x, mask, wg, bg, wt, bt,
                             compute_dtype=jnp.bfloat16))
    assert out_bf16.shape == (seq, batch, hidden)
    assert jnp.allclose(out_bf16, ref, atol=5e-2, rtol=5e-2), "bf16 mismatch"

    print("KERNEL_OK")
</pallas_src>

<mosaic_0001>
module attributes {stable_mosaic.version = 11 : i64} {
  func.func @_gated_kernel(%arg0: i32, %arg1: memref<2x8x32xf32, #tpu.memory_space<vmem>>, %arg2: memref<2x8xf32, #tpu.memory_space<vmem>>, %arg3: memref<32x32xf32, #tpu.memory_space<vmem>>, %arg4: memref<1x32xf32, #tpu.memory_space<vmem>>, %arg5: memref<1x32xf32, #tpu.memory_space<vmem>>, %arg6: memref<1xf32, #tpu.memory_space<smem>>, %arg7: memref<2x8x32xf32, #tpu.memory_space<vmem>>) attributes {dimension_semantics = [#tpu.dimension_semantics<parallel>], iteration_bounds = array<i64: 1>, scalar_prefetch = 0 : i64, scratch_operands = 0 : i64, tpu.core_type = #tpu.core_type<tc>, window_params = [{transform_indices = @transform_0, window_bounds = array<i64: 2, 8, 32>}, {transform_indices = @transform_1, window_bounds = array<i64: 2, 8>}, {pipeline_mode = #tpu.pipeline_mode<synchronous>, transform_indices = @transform_2, window_bounds = array<i64: 32, 32>}, {pipeline_mode = #tpu.pipeline_mode<synchronous>, transform_indices = @transform_3, window_bounds = array<i64: 1, 32>}, {pipeline_mode = #tpu.pipeline_mode<synchronous>, transform_indices = @transform_4, window_bounds = array<i64: 1, 32>}, {transform_indices = @transform_5, window_bounds = array<i64: 1>}, {transform_indices = @transform_6, window_bounds = array<i64: 2, 8, 32>}]} {
    %c0 = arith.constant 0 : index
    %c0_0 = arith.constant 0 : index
    %c0_1 = arith.constant 0 : index
    %0 = vector.load %arg1[%c0, %c0_0, %c0_1] : memref<2x8x32xf32, #tpu.memory_space<vmem>>, vector<2x8x32xf32>
    %1 = vector.shape_cast %0 : vector<2x8x32xf32> to vector<16x32xf32>
    %c0_2 = arith.constant 0 : index
    %c0_3 = arith.constant 0 : index
    %2 = vector.load %arg3[%c0_2, %c0_3] : memref<32x32xf32, #tpu.memory_space<vmem>>, vector<32x32xf32>
    %cst = arith.constant dense<0.000000e+00> : vector<16x32xf32>
    %3 = tpu.matmul %1, %2, %cst {dimension_numbers = #tpu.dot_dimension_numbers<[1], [0], [0], [1], [0, 0, 1, 1], [], []>} : vector<16x32xf32>, vector<32x32xf32>, vector<16x32xf32> -> vector<16x32xf32>
    %c0_4 = arith.constant 0 : index
    %c0_5 = arith.constant 0 : index
    %4 = vector.load %arg4[%c0_4, %c0_5] : memref<1x32xf32, #tpu.memory_space<vmem>>, vector<1x32xf32>
    %5 = vector.broadcast %4 : vector<1x32xf32> to vector<16x32xf32>
    %6 = arith.addf %3, %5 : vector<16x32xf32>
    %7 = math.tanh %6 : vector<16x32xf32>
    %8 = vector.shape_cast %7 : vector<16x32xf32> to vector<2x8x32xf32>
    %c0_6 = arith.constant 0 : index
    %c0_7 = arith.constant 0 : index
    %9 = vector.load %arg5[%c0_6, %c0_7] : memref<1x32xf32, #tpu.memory_space<vmem>>, vector<1x32xf32>
    %10 = vector.shape_cast %9 : vector<1x32xf32> to vector<1x1x32xf32>
    %11 = vector.broadcast %10 : vector<1x1x32xf32> to vector<2x8x32xf32>
    %12 = arith.mulf %8, %11 : vector<2x8x32xf32>
    %cst_8 = arith.constant dense<0.000000e+00> : vector<2x8xf32>
    %13 = vector.multi_reduction <add>, %12, %cst_8 [2] : vector<2x8x32xf32> to vector<2x8xf32>
    %c0_9 = arith.constant 0 : index
    %14 = memref.load %arg6[%c0_9] : memref<1xf32, #tpu.memory_space<smem>>
    %15 = vector.broadcast %14 : f32 to vector<2x8xf32>
    %16 = arith.addf %13, %15 : vector<2x8xf32>
    %c0_10 = arith.constant 0 : index
    %c0_11 = arith.constant 0 : index
    %17 = vector.load %arg2[%c0_10, %c0_11] : memref<2x8xf32, #tpu.memory_space<vmem>>, vector<2x8xf32>
    %18 = arith.mulf %16, %17 : vector<2x8xf32>
    %cst_12 = arith.constant dense<0xFF800000> : vector<2xf32>
    %19 = vector.multi_reduction <maximumf>, %18, %cst_12 [1] : vector<2x8xf32> to vector<2xf32>
    %20 = vector.shape_cast %19 : vector<2xf32> to vector<2x1xf32>
    %21 = vector.broadcast %20 : vector<2x1xf32> to vector<2x8xf32>
    %22 = arith.subf %18, %21 : vector<2x8xf32>
    %23 = math.exp %22 : vector<2x8xf32>
    %24 = arith.mulf %23, %17 : vector<2x8xf32>
    %cst_13 = arith.constant dense<0.000000e+00> : vector<2xf32>
    %25 = vector.multi_reduction <add>, %24, %cst_13 [1] : vector<2x8xf32> to vector<2xf32>
    %26 = vector.shape_cast %25 : vector<2xf32> to vector<2x1xf32>
    %cst_14 = arith.constant 9.99999997E-7 : f32
    %27 = vector.broadcast %cst_14 : f32 to vector<2x1xf32>
    %28 = arith.addf %26, %27 : vector<2x1xf32>
    %29 = vector.broadcast %28 : vector<2x1xf32> to vector<2x8xf32>
    %30 = arith.divf %24, %29 : vector<2x8xf32>
    %31 = vector.shape_cast %30 : vector<2x8xf32> to vector<2x8x1xf32>
    %32 = vector.broadcast %31 : vector<2x8x1xf32> to vector<2x8x32xf32>
    %33 = arith.mulf %0, %32 : vector<2x8x32xf32>
    %c0_15 = arith.constant 0 : index
    %c0_16 = arith.constant 0 : index
    %c0_17 = arith.constant 0 : index
    %34 = vector.load %arg7[%c0_15, %c0_16, %c0_17] : memref<2x8x32xf32, #tpu.memory_space<vmem>>, vector<2x8x32xf32>
    tpu.vector_store %arg7[%c0_15, %c0_16, %c0_17], %33 {strides = array<i32>} : memref<2x8x32xf32, #tpu.memory_space<vmem>>, vector<2x8x32xf32>,
    return
  }
  func.func @transform_0(%arg0: i32) -> (i32, i32, i32) {
    %c0_i32 = arith.constant 0 : i32
    %c0_i32_0 = arith.constant 0 : i32
    %c0_i32_1 = arith.constant 0 : i32
    return %arg0, %c0_i32, %c0_i32_0 : i32, i32, i32
  }
  func.func @transform_1(%arg0: i32) -> (i32, i32) {
    %c0_i32 = arith.constant 0 : i32
    %c0_i32_0 = arith.constant 0 : i32
    return %arg0, %c0_i32 : i32, i32
  }
  func.func @transform_2(%arg0: i32) -> (i32, i32) {
    %c0_i32 = arith.constant 0 : i32
    %c0_i32_0 = arith.constant 0 : i32
    %c0_i32_1 = arith.constant 0 : i32
    return %c0_i32, %c0_i32_0 : i32, i32
  }
  func.func @transform_3(%arg0: i32) -> (i32, i32) {
    %c0_i32 = arith.constant 0 : i32
    %c0_i32_0 = arith.constant 0 : i32
    %c0_i32_1 = arith.constant 0 : i32
    return %c0_i32, %c0_i32_0 : i32, i32
  }
  func.func @transform_4(%arg0: i32) -> (i32, i32) {
    %c0_i32 = arith.constant 0 : i32
    %c0_i32_0 = arith.constant 0 : i32
    %c0_i32_1 = arith.constant 0 : i32
    return %c0_i32, %c0_i32_0 : i32, i32
  }
  func.func @transform_5(%arg0: i32) -> i32 {
    %c0_i32 = arith.constant 0 : i32
    %c0_i32_0 = arith.constant 0 : i32
    return %c0_i32 : i32
  }
  func.func @transform_6(%arg0: i32) -> (i32, i32, i32) {
    %c0_i32 = arith.constant 0 : i32
    %c0_i32_0 = arith.constant 0 : i32
    %c0_i32_1 = arith.constant 0 : i32
    return %arg0, %c0_i32, %c0_i32_0 : i32, i32, i32
  }
}

</mosaic_0001>

<bundles_post_ra>
// kernel: self_attention_gated_bsd.1
= control target key start
LH: loop header
LB: loop body
LE: loop exit
PB: predicated region body
PF: predicated region fallthrough
CT: control target
= control target key end

     0   :  { %vm38_vm0 = vcmask 261120   ;;  %s452_s0 = inlined_call_operand.vmem [shape: f32[2,8,32], index: 0, kind: input, shape index: {}]   ;;  %s453_s1 = inlined_call_operand.vmem [shape: f32[2,8], index: 1, kind: input, shape index: {}]   ;;  %s454_s2 = inlined_call_operand.vmem [shape: f32[32,32], index: 2, kind: input, shape index: {}]   ;;  %s455_s3 = inlined_call_operand.vmem [shape: f32[1,32], index: 3, kind: input, shape index: {}]   ;;  %s456_s4 = inlined_call_operand.vmem [shape: f32[1,32], index: 4, kind: input, shape index: {}]   ;;  %s457_s5 = inlined_call_operand.<no memory space> [shape: f32[1], index: 5, kind: input, shape index: {}]   ;;  %s458_s6 = inlined_call_operand.hbm [shape: f32[2,8,32], index: 6, kind: output, shape index: {}]  }
   0x1   :  { %v27_v0 = vld [vmem:[%s454_s2] sm:$0xff]  ;;  %v28_v1 = vld [vmem:[%s454_s2 + $0x8] sm:$0xff]  ;;  %v29_v2 = vld [vmem:[%s454_s2 + $0x10] sm:$0xff] }
   0x2   :  { %v293_v3 = vpack.c.bf16 %v28_v1, %v27_v0  ;;  %v30_v4 = vld [vmem:[%s454_s2 + $0x18] sm:$0xff]  ;;  %v397_v5 = vld [vmem:[%s452_s0] sm:$0xff] }
   0x3   :  { %v297_v6 = vpack.c.bf16 %v30_v4, %v29_v2  ;;  %290 = vmatprep.mubr.msk.f32.mxu0 %vm38_vm0, %v397_v5 }
   0x4   :  { %12 = vsyncpa [#allocation4], 0  ;;  %294 = vmatprep.subr.bf16.mxu0 %v293_v3  ;;  %v404_v7 = vld [vmem:[%s452_s0 + $0x8] sm:$0xff]  ;;  %v143_v8 = vlaneseq  ;;  %v141_v10 = vld [vmem:[%s453_s1] sm:$0x3]  ;;  %v343_v27 = vmov 0   ;;  %v138_v28 = vstv %s457_s5 }
   0x5   :  { %296 = vmatpush3.bf16.msra.mxu0 %v293_v3  ;;  %v272_v15 = vld [vmem:[%s455_s3] ss:$0 sm:$0xff]  ;;  %305 = vset.pattern.permute.xlu0 %v343_v27  ;;  %vm179_vm1 = vcmask 1041409   ;;  %vm182_vm2 = vcmask 58368  }
   0x6   :  { %298 = vmatprep.subr.bf16.mxu0 %v297_v6  ;;  %v144_v9 = vshrl.u32 %v143_v8, 7  ;;  %v275_v20 = vld [vmem:[%s456_s4] ss:$0 sm:$0xff]  ;;  %306 = vset.pattern.permute.xlu1 %v343_v27  ;;  %v170_v37 = vand.u32 127, %v143_v8  ;;  %s344_s4 = smov [#allocation3]  }
   0x7   :  { %s261_s5 = sshll.u32 %s344_s4, 4  ;;  %s262_s5 = int_to_ptr.vmem [resolvable:$true] %s261_s5 }
   0x8   :  { %v411_v11 = vsub.s32 0, %v144_v9  ;;  %v413_v12 = vsub.s32 1, %v144_v9  ;;  %v173_v38 = vsub.s32 %v170_v37, %v144_v9  ;;  %s319_s13 = scalar_lea.vmem %s262_s5, 256  ;;  %p324_p1 = scmp.lt.s32.totalorder %s262_s5, %s262_s5 }
   0x9   :  { %300 = vmatpush3.bf16.msra.mxu0 %v297_v6  ;;  %p320_p0 = scmp.ne.s32.totalorder %s262_s5, %s319_s13  ;;  %p325_p2 = scmp.lt.s32.totalorder %s319_s13, %s319_s13 }
   0xa   :  { %v146_v13 = vrot.slane %v141_v10, %v411_v11  ;;  %v153_v14 = vrot.slane %v141_v10, %v413_v12 }
   0xb   :  { %p326_p3 = por %p325_p2, %p324_p1 }
   0xc   :  { %291 = vmatmul.mubr.msk.f32.vlgmr.msra.gmra.mrb[0].mxu0 %vm38_vm0, %v404_v7  ;;  %148 = vbcast.lane.b32.xlu1 %v146_v13, 256 }
   0xd   :  { %p327_p4 = pnand %p326_p3, %p320_p0 }
  0x10   :  { %155 = vbcast.lane.b32.xlu1 %v153_v14, 256 }
  0x7e   :  { %v149_v29 = vpop.permute.xlu1 %148 }
  0x82   :  { %v156_v34 = vpop.permute.xlu1 %155 }
  0xdf   :  { %v292_v16 = vpop.f32.mrb[0].mxu0 }
  0xe0   :  { %v117_v17 = vadd.f32 %v292_v16, %v272_v15  ;;  %v111_v18 = vpop.f32.mrb[1].mxu0 }
  0xe1   :  { %v112_v19 = vadd.f32 %v272_v15, %v111_v18 }
  0xe2   :  { %307 = vtanh.f32 %v117_v17 }
  0xe3   :  { %309 = vtanh.f32 %v112_v19 }
  0xec   :  { %v308_v21 = vpop.eup %307 }
  0xed   :  { %v310_v22 = vpop.eup %309  ;;  %v130_v25 = vmul.f32 %v308_v21, %v275_v20 }
  0xee   :  { %v129_v23 = vmul.f32 %v310_v22, %v275_v20 }
  0xef   :  { %v134_v26 = vsel %vm38_vm0, %v130_v25, 0.0 }
  0xf0   :  { %v131_v24 = vsel %vm38_vm0, %v129_v23, 0.0 }
  0xf1   :  { %132 = vadd.xlane.f32.xlu0 %v131_v24 }
  0xf5   :  { %135 = vadd.xlane.f32.xlu0 %v134_v26 }
 0x17e   :  { %v133_v30 = vpop.xlane.xlu0 %132 }
 0x17f   :  { %v139_v31 = vadd.f32 %v138_v28, %v133_v30 }
 0x181   :  { %v159_v32 = vmul.f32 %v149_v29, %v139_v31 }
 0x182   :  { %v136_v33 = vpop.xlane.xlu0 %135 }
 0x183   :  { %v140_v35 = vadd.f32 %v138_v28, %v136_v33  ;;  %164 = vperm.xlu0 %305, %v159_v32  }
 0x185   :  { %v160_v36 = vmul.f32 %v156_v34, %v140_v35 }
 0x187   :  { %167 = vperm.xlu1 %306, %v160_v36  }
 0x202   :  { %v165_v39 = vpop.permute.xlu0 %164 }
 0x203   :  { %v174_v41 = vrot.slane %v165_v39, %v173_v38 }
 0x206   :  { %v168_v40 = vpop.permute.xlu1 %167 }
 0x207   :  { %v178_v42 = vrot.slane %v168_v40, %v173_v38 }
 0x209   :  { %v180_v43 = vsel %vm179_vm1, %v178_v42, %v174_v41 }
 0x20a   :  { %v183_v44 = vsel %vm182_vm2, %v180_v43, -inf }
 0x20b   :  { %184 = vmax.xlane.f32.xlu1 %v183_v44 }
 0x298   :  { %v185_v45 = vpop.xlane.xlu1 %184 }
 0x299   :  { %v190_v46 = vrot.slane %v185_v45, %v411_v11  ;;  %v194_v47 = vrot.slane %v185_v45, %v413_v12 }
 0x29b   :  { %v197_v48 = vsub.f32 %v159_v32, %v190_v46  ;;  %v198_v49 = vsub.f32 %v160_v36, %v194_v47 }
 0x29d   :  { %v199_v50 = vmul.f32 1.442695, %v197_v48  ;;  %v201_v51 = vmul.f32 1.442695, %v198_v49 }
 0x29f   :  { %311 = vpow2.f32 %v199_v50 }
 0x2a0   :  { %313 = vpow2.f32 %v201_v51 }
 0x2a9   :  { %v312_v52 = vpop.eup %311 }
 0x2aa   :  { %v314_v53 = vpop.eup %313  ;;  %v203_v54 = vmul.f32 %v312_v52, %v149_v29 }
 0x2ab   :  { %v204_v55 = vmul.f32 %v314_v53, %v156_v34 }
 0x2ac   :  { %208 = vperm.xlu1 %306, %v203_v54  }
 0x2ad   :  { %211 = vperm.xlu0 %305, %v204_v55  }
 0x32b   :  { %v209_v56 = vpop.permute.xlu1 %208 }
 0x32c   :  { %v212_v57 = vpop.permute.xlu0 %211  ;;  %v216_v58 = vrot.slane %v209_v56, %v173_v38 }
 0x32d   :  { %v220_v59 = vrot.slane %v212_v57, %v173_v38 }
 0x32f   :  { %v221_v60 = vsel %vm179_vm1, %v220_v59, %v216_v58 }
 0x330   :  { %v223_v61 = vsel %vm182_vm2, %v221_v60, 0.0 }
 0x331   :  { %224 = vadd.xlane.f32.xlu0 %v223_v61 }
 0x3be   :  { %v225_v62 = vpop.xlane.xlu0 %224 }
 0x3bf   :  { %v226_v63 = vadd.f32 1e-06, %v225_v62 }
 0x3c1   :  { %v231_v0 = vrot.slane %v226_v63, %v411_v11  ;;  %v235_v1 = vrot.slane %v226_v63, %v413_v12 }
 0x3c3   :  { %315 = vrcp.f32 %v231_v0 }
 0x3c4   :  { %317 = vrcp.f32 %v235_v1 }
 0x3cd   :  { %v316_v2 = vpop.eup %315 }
 0x3ce   :  { %v239_v3 = vmul.f32 %v316_v2, %v203_v54  ;;  %v318_v4 = vpop.eup %317 }
 0x3cf   :  { %v241_v6 = vmul.f32 %v318_v4, %v204_v55 }
 0x3d0   :  { %244 = vperm.xlu1 %306, %v239_v3  }
 0x3d4   :  { %249 = vperm.xlu1 %306, %v241_v6  }
 0x44f   :  { %v245_v8 = vpop.permute.xlu1 %244 }
 0x450   :  { %v252_v9 = vmul.f32 %v245_v8, %v397_v5 }
 0x452   :  { %254 = vst.msk [vmem:[#allocation3] sm:$0xff] %vm38_vm0, %v252_v9 }
 0x453   :  { %v250_v10 = vpop.permute.xlu1 %249 }
 0x454   :  { %v253_v11 = vmul.f32 %v250_v10, %v404_v7 }
 0x456   :  { %255 = vst.msk [vmem:[#allocation3 + $0x8] sm:$0xff] %vm38_vm0, %v253_v11 }
 0x457   :  { %330 = shalt.err (!%p327_p4)
}
 0x458   :  { %s331_s16 = scalar_lea.hbm %s458_s6, 256 }
 0x459   :  { %p332_p5 = scmp.ne.s32.totalorder %s458_s6, %s331_s16  ;;  %p335_p6 = scmp.lt.u32.totalorder %s331_s16, %s458_s6 }
 0x45b   :  { %p337_p7 = pnand %p335_p6, %p332_p5 }
 0x45d   :  { %340 = shalt.err (!%p337_p7)
}
 0x45e   :  { %s345_s21 = smov 128   ;;  %s346_s22 = smov 8  }
 0x45f   :  { %267 = dma.vmem_to_hbm [thread:$0]  %s262_s5, 256, %s458_s6, [#allocation4], %s345_s21, %s345_s21, %s346_s22  }
 0x460   :  { %341 = dma.done.wait [#allocation4], 256  }
 0x461   :  { %342 = vsyncadd [#allocation4], 4294967040 }
 0x462   :  { %271 = vsyncpa [#allocation4], 1 }

</bundles_post_ra>
